<compile_context>
chip_gen: v5e
topology: v5e:2x2
jax: 0.10.0
libtpu: 0.0.40
codegen_flags: <defaults>
</compile_context>

<pallas_src>
import functools

import jax
import jax.numpy as jnp
from jax.experimental import pallas as pl
from jax.experimental.pallas import tpu as pltpu


def _round_up(v, m):
    return (v + m - 1) // m * m


def _round_down(v, m):
    return max(m, v // m * m)


def _sublane_multiple(dtype):
    # f32 -> 8, bf16 -> 16, int8/fp8 -> 32 (sub-32-bit dtypes pack along sublanes).
    return max(8, 32 // jnp.dtype(dtype).itemsize)


# --------------------------- kernels ---------------------------------------


def _mm_single_k_kernel(x_ref, w_ref, o_ref):
    # Whole contraction dim in one block: single MXU pass per (i, j) tile.
    o_ref[...] = jnp.dot(
        x_ref[...], w_ref[...], preferred_element_type=jnp.float32
    ).astype(o_ref.dtype)


def _mm_multi_k_f32_kernel(x_ref, w_ref, o_ref):
    # f32 output: accumulate directly into the resident output block (no scratch).
    @pl.when(pl.program_id(2) == 0)
    def _():
        o_ref[...] = jnp.zeros_like(o_ref)

    o_ref[...] += jnp.dot(x_ref[...], w_ref[...], preferred_element_type=jnp.float32)


def _mm_multi_k_acc_kernel(x_ref, w_ref, o_ref, acc_ref):
    # Narrow output dtype (bf16): accumulate in f32 scratch, cast once at the end.
    k = pl.program_id(2)

    @pl.when(k == 0)
    def _():
        acc_ref[...] = jnp.zeros_like(acc_ref)

    acc_ref[...] += jnp.dot(x_ref[...], w_ref[...], preferred_element_type=jnp.float32)

    @pl.when(k == pl.num_programs(2) - 1)
    def _():
        o_ref[...] = acc_ref[...].astype(o_ref.dtype)


# --------------------------- wrapper ----------------------------------------


_TINY_FLOPS = 1 << 21  # below ~2 MFLOP, XLA's fused matmul beats kernel dispatch cost


@functools.partial(jax.jit, static_argnames=("tm", "tn", "tk", "force_pallas"))
def tied_transpose(x, weight, *, tm=512, tn=1024, tk=1024, force_pallas=False):
    """y = x @ weight, where weight is the nn.Linear weight (out_features, in_features).

    Equivalent to F.linear(x, weight.t(), None)  (TiedTranspose.forward).
    Supported dtypes for the Pallas path: f32 / bf16 (f32 accumulation on the MXU).
    Integer / fp8 inputs fall back to XLA.
    """
    orig_shape = x.shape
    out_features, in_features = weight.shape
    assert orig_shape[-1] == out_features, "x last dim must equal linear.out_features"

    x2d = x.reshape(-1, out_features)
    M, K = x2d.shape
    N = in_features
    out_dtype = x.dtype

    floating = jnp.issubdtype(x2d.dtype, jnp.floating) and jnp.issubdtype(
        weight.dtype, jnp.floating
    )
    tiny = 2 * M * N * K < _TINY_FLOPS
    if (not floating) or (tiny and not force_pallas):
        # Tiny-shape / unsupported-dtype fast path: let XLA's fused matmul handle it.
        y2d = jnp.dot(x2d, weight).astype(out_dtype)
        return y2d.reshape(*orig_shape[:-1], in_features)

    sub = _sublane_multiple(x2d.dtype)

    # ---- tile selection (generation-portable) -------------------------------
    # M tile: cover all of M when it fits, so the weight panel streams from HBM
    # exactly once (grid_m == 1); otherwise a 256-aligned cap (v6e/v7x MXU is
    # 2x256x256; 256 is also fine on v5e's 4x128x128).
    if M <= tm:
        tm_ = M
    else:
        tm_ = _round_down(tm, 256) if tm >= 256 else _round_down(tm, sub)

    # N tile: full extent when it fits, else 256-aligned cap (128 as hard floor).
    if N <= tn:
        tn_ = N
    else:
        tn_ = _round_down(tn, 256) if tn >= 256 else _round_down(tn, 128)

    # K tile: single block when it fits; otherwise balance the k steps so the
    # zero-padding of the ragged tail stays small.
    if K <= tk:
        tk_ = K
    else:
        cap = _round_down(tk, 128)
        nk = pl.cdiv(K, cap)
        tk_ = _round_up(pl.cdiv(K, nk), 128)

    grid_m, grid_n, grid_k = pl.cdiv(M, tm_), pl.cdiv(N, tn_), pl.cdiv(K, tk_)

    # v7x has 2 TensorCores sharded over the "parallel" grid axes; split a 1x1
    # parallel grid along N so the second core is not idle.
    if grid_m == 1 and grid_n == 1 and N >= 256:
        tn_ = _round_up(pl.cdiv(N, 2), 128)
        grid_n = pl.cdiv(N, tn_)

    # Only K needs real zero-padding (garbage in a ragged reduction block would
    # corrupt the accumulation).  Ragged M/N edges are handled by Pallas masking
    # partial output blocks, so no padded copies of x / weight / y are needed.
    Kp = grid_k * tk_
    if Kp != K:
        # TODO(synk): for a fixed tokenizer weight, hoist this K-pad of `weight`
        # out of the per-call path (pad once at parameter-init time).
        x2d = jnp.pad(x2d, ((0, 0), (0, Kp - K)))
        w = jnp.pad(weight, ((0, Kp - K), (0, 0)))
    else:
        w = weight

    needs_scratch = grid_k > 1 and out_dtype != jnp.float32

    # Explicit VMEM limit: footprint with double buffering, capped below v7x's
    # 64 MiB physical VMEM (default tiles come to ~16-20 MiB, fine everywhere).
    in_sz = jnp.dtype(x2d.dtype).itemsize
    w_sz = jnp.dtype(w.dtype).itemsize
    out_sz = jnp.dtype(out_dtype).itemsize
    vmem_bytes = (
        2 * tm_ * tk_ * in_sz
        + 2 * tk_ * tn_ * w_sz
        + 2 * tm_ * tn_ * out_sz
        + (tm_ * tn_ * 4 if needs_scratch else 0)
    )
    vmem_limit = int(min(48 << 20, max(vmem_bytes + (4 << 20), 16 << 20)))

    cost = pl.CostEstimate(
        flops=2 * M * N * K,
        transcendentals=0,
        bytes_accessed=(M * K) * in_sz + (K * N) * w_sz + (M * N) * out_sz,
    )

    if grid_k == 1:
        # K fits in one block: no reduction axis, no accumulator.
        y2d = pl.pallas_call(
            _mm_single_k_kernel,
            out_shape=jax.ShapeDtypeStruct((M, N), out_dtype),
            grid_spec=pltpu.PrefetchScalarGridSpec(
                num_scalar_prefetch=0,
                grid=(grid_m, grid_n),
                in_specs=[
                    pl.BlockSpec((tm_, tk_), lambda i, j: (i, 0)),  # x tile
                    pl.BlockSpec((tk_, tn_), lambda i, j: (0, j)),  # weight tile
                ],
                out_specs=pl.BlockSpec((tm_, tn_), lambda i, j: (i, j)),
            ),
            compiler_params=pltpu.CompilerParams(
                dimension_semantics=("parallel", "parallel"),
                vmem_limit_bytes=vmem_limit,
            ),
            cost_estimate=cost,
        )(x2d, w)
    else:
        if needs_scratch:
            kernel = _mm_multi_k_acc_kernel
            scratch = [pltpu.VMEM((tm_, tn_), jnp.float32)]
        else:
            kernel = _mm_multi_k_f32_kernel
            scratch = []
        y2d = pl.pallas_call(
            kernel,
            out_shape=jax.ShapeDtypeStruct((M, N), out_dtype),
            grid_spec=pltpu.PrefetchScalarGridSpec(
                num_scalar_prefetch=0,
                grid=(grid_m, grid_n, grid_k),
                in_specs=[
                    pl.BlockSpec((tm_, tk_), lambda i, j, k: (i, k)),  # x tile
                    pl.BlockSpec((tk_, tn_), lambda i, j, k: (k, j)),  # weight tile
                ],
                out_specs=pl.BlockSpec((tm_, tn_), lambda i, j, k: (i, j)),
                scratch_shapes=scratch,
            ),
            compiler_params=pltpu.CompilerParams(
                dimension_semantics=("parallel", "parallel", "arbitrary"),
                vmem_limit_bytes=vmem_limit,
            ),
            cost_estimate=cost,
        )(x2d, w)

    return y2d.reshape(*orig_shape[:-1], in_features)


if __name__ == "__main__":
    key = jax.random.PRNGKey(0)
    k1, k2, k3, k4, k5, k6 = jax.random.split(key, 6)

    # ---- main test: small shapes consistent with the module (forced Pallas path)
    in_features = 128    # linear.in_features  -> output feature dim
    out_features = 256   # linear.out_features -> input feature dim (x last dim)

    # nn.Linear weight has shape (out_features, in_features).
    weight = jax.random.normal(k1, (out_features, in_features), dtype=jnp.float32) * 0.02
    x = jax.random.normal(k2, (2, 4, out_features), dtype=jnp.float32)  # multi-dim batch

    y = jax.block_until_ready(tied_transpose(x, weight, force_pallas=True))
    y_ref = x @ weight  # same semantics as F.linear(x, W.t(), None)
    assert y.shape == (2, 4, in_features), y.shape
    assert jnp.allclose(y, y_ref, atol=1e-4, rtol=1e-4), "mismatch (main, pallas)"

    # default path (tiny-shape fast path) must agree too
    y_fast = jax.block_until_ready(tied_transpose(x, weight))
    assert jnp.allclose(y_fast, y_ref, atol=1e-4, rtol=1e-4), "mismatch (fast path)"

    # ---- ragged single-block test: full-extent blocks, no padding anywhere
    of2, if2 = 96, 70
    w2 = jax.random.normal(k3, (of2, if2), dtype=jnp.float32) * 0.02
    x2 = jax.random.normal(k4, (5, of2), dtype=jnp.float32)
    y2 = jax.block_until_ready(tied_transpose(x2, w2, force_pallas=True))
    assert y2.shape == (5, if2), y2.shape
    assert jnp.allclose(y2, x2 @ w2, atol=1e-4, rtol=1e-4), "mismatch (ragged)"

    # ---- multi-tile / multi-K f32 test (ragged M & N edges + K zero-pad path)
    M3, K3, N3 = 40, 300, 200
    w3 = jax.random.normal(k5, (K3, N3), dtype=jnp.float32) * 0.02
    x3 = jax.random.normal(k6, (M3, K3), dtype=jnp.float32)
    y3 = jax.block_until_ready(
        tied_transpose(x3, w3, tm=16, tn=128, tk=128, force_pallas=True))
    assert y3.shape == (M3, N3), y3.shape
    assert jnp.allclose(y3, x3 @ w3, atol=1e-3, rtol=1e-3), "mismatch (multi-K f32)"

    # ---- bf16 multi-K test (f32 scratch accumulator + final cast)
    xb = x3.astype(jnp.bfloat16)
    wb = w3.astype(jnp.bfloat16)
    yb = jax.block_until_ready(
        tied_transpose(xb, wb, tm=16, tn=128, tk=128, force_pallas=True))
    yb_ref = (xb.astype(jnp.float32) @ wb.astype(jnp.float32)).astype(jnp.bfloat16)
    assert yb.shape == (M3, N3), yb.shape
    assert jnp.allclose(yb.astype(jnp.float32), yb_ref.astype(jnp.float32),
                        atol=2e-2, rtol=2e-2), "mismatch (multi-K bf16)"

    print("KERNEL_OK")
</pallas_src>

<mosaic_0001>
module attributes {stable_mosaic.version = 11 : i64} {
  func.func @_mm_single_k_kernel(%arg0: i32, %arg1: i32, %arg2: memref<8x256xf32, #tpu.memory_space<vmem>>, %arg3: memref<256x128xf32, #tpu.memory_space<vmem>>, %arg4: memref<8x128xf32, #tpu.memory_space<vmem>>) attributes {dimension_semantics = [#tpu.dimension_semantics<parallel>, #tpu.dimension_semantics<parallel>], iteration_bounds = array<i64: 1, 1>, scalar_prefetch = 0 : i64, scratch_operands = 0 : i64, tpu.core_type = #tpu.core_type<tc>, window_params = [{transform_indices = @transform_0, window_bounds = array<i64: 8, 256>}, {transform_indices = @transform_1, window_bounds = array<i64: 256, 128>}, {transform_indices = @transform_2, window_bounds = array<i64: 8, 128>}]} {
    %c0 = arith.constant 0 : index
    %c0_0 = arith.constant 0 : index
    %0 = vector.load %arg2[%c0, %c0_0] : memref<8x256xf32, #tpu.memory_space<vmem>>, vector<8x256xf32>
    %c0_1 = arith.constant 0 : index
    %c0_2 = arith.constant 0 : index
    %1 = vector.load %arg3[%c0_1, %c0_2] : memref<256x128xf32, #tpu.memory_space<vmem>>, vector<256x128xf32>
    %cst = arith.constant dense<0.000000e+00> : vector<8x128xf32>
    %2 = tpu.matmul %0, %1, %cst {dimension_numbers = #tpu.dot_dimension_numbers<[1], [0], [0], [1], [0, 0, 1, 1], [], []>} : vector<8x256xf32>, vector<256x128xf32>, vector<8x128xf32> -> vector<8x128xf32>
    %c0_3 = arith.constant 0 : index
    %c0_4 = arith.constant 0 : index
    %3 = vector.load %arg4[%c0_3, %c0_4] : memref<8x128xf32, #tpu.memory_space<vmem>>, vector<8x128xf32>
    tpu.vector_store %arg4[%c0_3, %c0_4], %2 {strides = array<i32>} : memref<8x128xf32, #tpu.memory_space<vmem>>, vector<8x128xf32>,
    return
  }
  func.func @transform_0(%arg0: i32, %arg1: i32) -> (i32, i32) {
    %c0_i32 = arith.constant 0 : i32
    %c0_i32_0 = arith.constant 0 : i32
    return %arg0, %c0_i32 : i32, i32
  }
  func.func @transform_1(%arg0: i32, %arg1: i32) -> (i32, i32) {
    %c0_i32 = arith.constant 0 : i32
    %c0_i32_0 = arith.constant 0 : i32
    return %c0_i32, %arg1 : i32, i32
  }
  func.func @transform_2(%arg0: i32, %arg1: i32) -> (i32, i32) {
    %c0_i32 = arith.constant 0 : i32
    return %arg0, %arg1 : i32, i32
  }
}

</mosaic_0001>

<bundles_post_ra>
// kernel: tied_transpose.1
= control target key start
LH: loop header
LB: loop body
LE: loop exit
PB: predicated region body
PF: predicated region fallthrough
CT: control target
= control target key end

     0   :  { %7 = vsyncpa [#allocation3], 0  ;;  %s207_s0 = inlined_call_operand.vmem [shape: f32[8,256], index: 0, kind: input, shape index: {}]   ;;  %s208_s1 = inlined_call_operand.hbm [shape: f32[256,128], index: 1, kind: input, shape index: {}]   ;;  %s209_s2 = inlined_call_operand.hbm [shape: f32[8,128], index: 2, kind: output, shape index: {}]  }
   0x1   :  { %8 = vsyncpa [#allocation4], 0  ;;  %s15_s11 = sshll.u32 %s208_s1, 4  ;;  %s176_s12 = smov [#allocation2]   ;;  %s16_s11 = int_to_ptr.hbm [resolvable:$true] %s15_s11 }
   0x2   :  { %s17_s13 = sshll.u32 %s176_s12, 4  ;;  %s177_s14 = smov 128   ;;  %s18_s13 = int_to_ptr.vmem [resolvable:$true] %s17_s13 }
   0x3   :  { %s178_s15 = smov 8  }
   0x4   :  { %23 = dma.hbm_to_vmem [thread:$0]  %s16_s11, 4096, %s18_s13, [#allocation3], %s177_s14, %s177_s14, %s178_s15  }
   0x5   :  { %172 = dma.done.wait [#allocation3], 4096  }
   0x6   :  { %173 = vsyncadd [#allocation3], 4294963200  ;;  %v45_v0 = vld [vmem:[#allocation2 + $0x78] sm:$0xff]  ;;  %v44_v2 = vld [vmem:[#allocation2 + $0x70] sm:$0xff]  ;;  %s179_s19 = smov [#allocation5]   ;;  %s110_s23 = sshll.u32 %s209_s2, 4  ;;  %s111_s23 = int_to_ptr.hbm [resolvable:$true] %s110_s23 }
   0x7   :  { %v61_v1 = vld [vmem:[#allocation2 + $0xf8] sm:$0xff]  ;;  %62 = vmatpush.msra.mxu0 %v45_v0  ;;  %v60_v3 = vld [vmem:[#allocation2 + $0xf0] sm:$0xff]  ;;  %v43_v4 = vld [vmem:[#allocation2 + $0x68] sm:$0xff]  ;;  %s108_s20 = sshll.u32 %s179_s19, 4  ;;  %s109_s20 = int_to_ptr.vmem [resolvable:$true] %s108_s20 }
   0x8   :  { %82 = vmatpush.msra.mxu1 %v61_v1  ;;  %v59_v5 = vld [vmem:[#allocation2 + $0xe8] sm:$0xff]  ;;  %v42_v6 = vld [vmem:[#allocation2 + $0x60] sm:$0xff]  ;;  %v41_v8 = vld [vmem:[#allocation2 + $0x58] sm:$0xff] }
   0x9   :  { %63 = vmatpush.msra.mxu0 %v44_v2  ;;  %v58_v7 = vld [vmem:[#allocation2 + $0xe0] sm:$0xff]  ;;  %v57_v9 = vld [vmem:[#allocation2 + $0xd8] sm:$0xff]  ;;  %v40_v10 = vld [vmem:[#allocation2 + $0x50] sm:$0xff] }
   0xa   :  { %83 = vmatpush.msra.mxu1 %v60_v3  ;;  %v56_v11 = vld [vmem:[#allocation2 + $0xd0] sm:$0xff]  ;;  %v39_v12 = vld [vmem:[#allocation2 + $0x48] sm:$0xff]  ;;  %v38_v14 = vld [vmem:[#allocation2 + $0x40] sm:$0xff] }
   0xb   :  { %64 = vmatpush.msra.mxu0 %v43_v4  ;;  %v55_v13 = vld [vmem:[#allocation2 + $0xc8] sm:$0xff]  ;;  %v54_v15 = vld [vmem:[#allocation2 + $0xc0] sm:$0xff]  ;;  %v37_v16 = vld [vmem:[#allocation2 + $0x38] sm:$0xff] }
   0xc   :  { %84 = vmatpush.msra.mxu1 %v59_v5  ;;  %v53_v17 = vld [vmem:[#allocation2 + $0xb8] sm:$0xff]  ;;  %v36_v18 = vld [vmem:[#allocation2 + $0x30] sm:$0xff]  ;;  %v35_v20 = vld [vmem:[#allocation2 + $0x28] sm:$0xff] }
   0xd   :  { %65 = vmatpush.msra.mxu0 %v42_v6  ;;  %v52_v19 = vld [vmem:[#allocation2 + $0xb0] sm:$0xff]  ;;  %v51_v21 = vld [vmem:[#allocation2 + $0xa8] sm:$0xff]  ;;  %v34_v22 = vld [vmem:[#allocation2 + $0x20] sm:$0xff] }
   0xe   :  { %85 = vmatpush.msra.mxu1 %v58_v7  ;;  %v50_v23 = vld [vmem:[#allocation2 + $0xa0] sm:$0xff]  ;;  %v33_v24 = vld [vmem:[#allocation2 + $0x18] sm:$0xff]  ;;  %v32_v26 = vld [vmem:[#allocation2 + $0x10] sm:$0xff] }
   0xf   :  { %66 = vmatpush.msra.mxu0 %v41_v8  ;;  %v49_v25 = vld [vmem:[#allocation2 + $0x98] sm:$0xff]  ;;  %v48_v27 = vld [vmem:[#allocation2 + $0x90] sm:$0xff]  ;;  %v31_v28 = vld [vmem:[#allocation2 + $0x8] sm:$0xff] }
  0x10   :  { %86 = vmatpush.msra.mxu1 %v57_v9  ;;  %v47_v29 = vld [vmem:[#allocation2 + $0x88] sm:$0xff]  ;;  %v30_v30 = vld [vmem:[#allocation2] sm:$0xff] }
  0x11   :  { %67 = vmatpush.msra.mxu0 %v40_v10  ;;  %v46_v31 = vld [vmem:[#allocation2 + $0x80] sm:$0xff]  ;;  %v29_v33 = vld [vmem:[%s207_s0 + $0x8] sm:$0xff] }
  0x12   :  { %87 = vmatpush.msra.mxu1 %v56_v11  ;;  %v28_v32 = vld [vmem:[%s207_s0] sm:$0xff] }
  0x13   :  { %68 = vmatpush.msra.mxu0 %v39_v12 }
  0x14   :  { %88 = vmatpush.msra.mxu1 %v55_v13 }
  0x15   :  { %69 = vmatpush.msra.mxu0 %v38_v14 }
  0x16   :  { %89 = vmatpush.msra.mxu1 %v54_v15 }
  0x17   :  { %70 = vmatpush.msra.mxu0 %v37_v16 }
  0x18   :  { %90 = vmatpush.msra.mxu1 %v53_v17 }
  0x19   :  { %71 = vmatpush.msra.mxu0 %v36_v18 }
  0x1a   :  { %91 = vmatpush.msra.mxu1 %v52_v19 }
  0x1b   :  { %72 = vmatpush.msra.mxu0 %v35_v20 }
  0x1c   :  { %92 = vmatpush.msra.mxu1 %v51_v21 }
  0x1d   :  { %73 = vmatpush.msra.mxu0 %v34_v22 }
  0x1e   :  { %93 = vmatpush.msra.mxu1 %v50_v23 }
  0x1f   :  { %74 = vmatpush.msra.mxu0 %v33_v24 }
  0x20   :  { %94 = vmatpush.msra.mxu1 %v49_v25 }
  0x21   :  { %75 = vmatpush.msra.mxu0 %v32_v26 }
  0x22   :  { %95 = vmatpush.msra.mxu1 %v48_v27 }
  0x23   :  { %76 = vmatpush.msra.mxu0 %v31_v28 }
  0x24   :  { %96 = vmatpush.msra.mxu1 %v47_v29 }
  0x25   :  { %77 = vmatpush.msra.mxu0 %v30_v30 }
  0x26   :  { %97 = vmatpush.msra.mxu1 %v46_v31  ;;  %78 = vmatmul.f32.vlgmr.msra.gmra.mxu0 %v28_v32 }
  0x27   :  { %98 = vmatmul.f32.vlgmr.msra.gmra.mxu1 %v29_v33 }
  0xa3   :  { %v79_v34 = vpop.f32.mrf.mxu0 }
  0xa4   :  { %v99_v35 = vpop.f32.mrf.mxu1 }
  0xa5   :  { %v100_v36 = vadd.f32 %v99_v35, %v79_v34 }
  0xa7   :  { %102 = vst [vmem:[#allocation5] sm:$0xff] %v100_v36 }
  0xa8   :  { %113 = dma.vmem_to_hbm [thread:$0]  %s109_s20, 128, %s111_s23, [#allocation4]  }
  0xa9   :  { %174 = dma.done.wait [#allocation4], 128  }
  0xaa   :  { %175 = vsyncadd [#allocation4], 4294967168 }
  0xab   :  { %118 = vsyncpa [#allocation3], 1 }
  0xac   :  { %119 = vsyncpa [#allocation4], 1 }

</bundles_post_ra>
